<compile_context>
chip_gen: v6e
topology: v6e:2x2x1
jax: 0.10.0
libtpu: 0.0.40
codegen_flags: <defaults>
</compile_context>

<pallas_src>
from itertools import zip_longest

import jax
import jax.numpy as jnp
from jax.experimental import pallas as pl
from jax.experimental.pallas import tpu as pltpu


def so3_tau(rep):
    """Channel multiplicities per weight l of a rep (list of parts)."""
    return tuple(int(p.shape[-3]) for p in rep)


_LANE = 128
_MIN_ROWS_FOR_PALLAS = 128   # below this, XLA concat (fusable) wins
_TARGET_GRID_STEPS = 8       # enough steps to pipeline; even split on v7x's 2 TCs
_ROW_TILE_FLOOR = 256        # rows; amortizes per-grid-step overhead


def _vmem_limit_bytes():
    """Generation-aware scoped-VMEM limit: ~3/4 of physical VMEM, capped at
    96 MiB (v5e/v6e: 128 MiB physical; v7x: 64 MiB per TensorCore)."""
    cap = 64 * 1024 * 1024
    try:
        info_cap = int(pltpu.get_tpu_info().vmem_capacity_bytes)
        if info_cap > 0:
            cap = info_cap
    except Exception:
        pass
    return int(min(cap * 3 // 4, 96 * 1024 * 1024))


def _sublane(dtype):
    """Min sublane tile for the dtype: 8 (f32), 16 (bf16), 32 (int8/fp8)."""
    itemsize = jnp.dtype(dtype).itemsize
    return max(8, 32 // max(1, itemsize))


def _padded_row_bytes(widths, dtype):
    """VMEM bytes one row of every (input + output) block occupies, accounting
    for lane padding to 128."""
    itemsize = jnp.dtype(dtype).itemsize
    return sum((-(-int(w) // _LANE)) * _LANE * itemsize for w in widths)


def _pick_row_tile(M, padded_row_bytes, sublane, budget):
    """Row tile R: VMEM-safe (x2 for double buffering), multiple of the
    dtype's sublane tile, with a grid-length floor so the pipeline overlaps."""
    def rdown(x):
        return max(sublane, (x // sublane) * sublane)

    def rup(x):
        return max(sublane, (-(-x // sublane)) * sublane)

    per_row = 2 * max(1, padded_row_bytes)          # x2: double-buffered blocks
    if sublane * per_row > budget:
        return None                                 # pathologically wide -> XLA
    r_vmem = rdown(budget // per_row)

    if M >= _TARGET_GRID_STEPS * sublane:
        r_steps = rdown(M // _TARGET_GRID_STEPS)    # keep >= ~8 grid steps
    else:
        r_steps = sublane
    r = max(rup(min(_ROW_TILE_FLOOR, M)), r_steps)
    r = min(r, r_vmem, rup(M))
    return max(r, sublane)


def _make_cat_kernel(groups, n_in):
    """Fused concat kernel.

    groups[out_idx] = list of (in_idx, col_offset, col_width): which input refs
    are copied into which column window of which output ref.
    """
    def kernel(*refs):
        in_refs = refs[:n_in]
        out_refs = refs[n_in:]
        for entries, out_ref in zip(groups, out_refs):
            for in_idx, off, width in entries:
                # Static column-window store (offsets are Python ints).
                out_ref[:, off:off + width] = in_refs[in_idx][...]
    return kernel


def _fused_cat(flats_per_l):
    """Single Pallas launch: per weight l, concatenate a list of (M, C_i)
    matrices column-wise.  Returns one (M, sum_i C_i) matrix per l."""
    M = flats_per_l[0][0].shape[0]
    dtype = flats_per_l[0][0].dtype

    all_inputs, groups, out_widths = [], [], []
    for parts in flats_per_l:
        entries, off = [], 0
        for p in parts:
            assert p.shape[0] == M and p.dtype == dtype, (
                "all parts must share leading dim (batch*atoms) and dtype")
            entries.append((len(all_inputs), off, p.shape[1]))
            all_inputs.append(p)
            off += p.shape[1]
        groups.append(entries)
        out_widths.append(off)

    vmem_limit = _vmem_limit_bytes()
    budget = int(vmem_limit * 0.8)       # headroom for compiler scratch
    sub = _sublane(dtype)
    prb = _padded_row_bytes([p.shape[1] for p in all_inputs] + out_widths, dtype)
    R = _pick_row_tile(M, prb, sub, budget)
    if R is None:                        # pathological width; XLA concat
        return [jnp.concatenate([all_inputs[i] for i, _, _ in g], axis=1)
                for g in groups]

    in_specs = [pl.BlockSpec((R, p.shape[1]), lambda i: (i, 0))
                for p in all_inputs]
    out_specs = [pl.BlockSpec((R, w), lambda i: (i, 0)) for w in out_widths]
    out_shape = tuple(jax.ShapeDtypeStruct((M, w), dtype) for w in out_widths)

    kernel = _make_cat_kernel(groups, len(all_inputs))
    outs = pl.pallas_call(
        kernel,
        out_shape=out_shape,
        grid=(pl.cdiv(M, R),),           # partial last block masked by Pallas
        in_specs=in_specs,
        out_specs=out_specs,
        compiler_params=pltpu.CompilerParams(
            dimension_semantics=("parallel",),
            vmem_limit_bytes=vmem_limit),
    )(*all_inputs)
    return list(outs)


class CatReps:
    """JAX/Pallas re-implementation of cormorant's CatReps module."""

    def __init__(self, taus_in, maxl=None):
        self.taus_in = [tuple(t) for t in taus_in if t]
        if maxl is None:
            maxl = max(len(t) - 1 for t in self.taus_in)
        self.maxl = maxl
        summed = [sum(ts) for ts in zip_longest(*self.taus_in, fillvalue=0)]
        self.tau_out = tuple(summed[: self.maxl + 1])

    def __call__(self, reps):
        reps = [rep for rep in reps if rep is not None]
        reps_taus_in = [so3_tau(rep) for rep in reps]
        if reps_taus_in != self.taus_in:
            raise ValueError(
                "Tau of input reps does not match predefined version! "
                "got: {} expected: {}".format(reps_taus_in, self.taus_in))
        # truncate to maxl
        reps = [rep[: self.maxl + 1] for rep in reps]

        # Gather parts per weight l, flattened to 2D (B*A, C*(2l+1)*2).
        flats_per_l, metas = [], []
        for l in range(self.maxl + 1):
            parts = [rep[l] for rep in reps if len(rep) > l]
            if not parts:
                continue
            B, A = parts[0].shape[:2]
            m = 2 * l + 1
            flats = [p.reshape(B * A, p.shape[2] * m * 2) for p in parts]
            flats_per_l.append(flats)
            metas.append((B, A, sum(p.shape[2] for p in parts), m))

        if not flats_per_l:
            return []

        M = flats_per_l[0][0].shape[0]
        if M >= _MIN_ROWS_FOR_PALLAS:
            cats = _fused_cat(flats_per_l)
        else:
            # Tiny inputs: a Pallas launch is pure overhead; let XLA fuse it.
            cats = [jnp.concatenate(flats, axis=1) for flats in flats_per_l]

        out = []
        for cat_flat, (B, A, c_tot, m) in zip(cats, metas):
            out.append(cat_flat.reshape(B, A, c_tot, m, 2))
        return out

    @property
    def tau(self):
        return self.tau_out


def _make_reps(key, taus_in, batch, atoms, dtype=jnp.float32):
    reps = []
    for tau in taus_in:
        rep = []
        for l, nch in enumerate(tau):
            key, sub = jax.random.split(key)
            rep.append(jax.random.normal(
                sub, (batch, atoms, nch, 2 * l + 1, 2), dtype=jnp.float32
            ).astype(dtype))
        reps.append(rep)
    return key, reps


def _check(cat, reps, out):
    for l in range(cat.maxl + 1):
        ref_l = jnp.concatenate([rep[l] for rep in reps if len(rep) > l], axis=2)
        assert out[l].shape == ref_l.shape, (out[l].shape, ref_l.shape)
        assert jnp.array_equal(out[l], ref_l), f"mismatch at l={l}"
    assert tuple(p.shape[2] for p in out) == cat.tau_out


if __name__ == "__main__":
    key = jax.random.PRNGKey(0)
    taus_in = [(8, 4), (16, 8)]  # channels per weight l for each rep
    cat = CatReps(taus_in)

    # 1) Main Pallas path: B*A = 1024 rows -> R = 256, grid = 4 ("parallel").
    key, reps = _make_reps(key, taus_in, batch=2, atoms=512)
    out = jax.block_until_ready(cat(reps))
    _check(cat, reps, out)

    # 2) Non-divisible M (B*A = 600): exercises cdiv grid + masked last block.
    key, reps_odd = _make_reps(key, taus_in, batch=2, atoms=300)
    out_odd = jax.block_until_ready(cat(reps_odd))
    _check(cat, reps_odd, out_odd)

    # 3) bf16 parts: dtype-aware sublane tile (16) on the Pallas path.
    key, reps_bf16 = _make_reps(key, taus_in, batch=2, atoms=512,
                                dtype=jnp.bfloat16)
    out_bf16 = jax.block_until_ready(cat(reps_bf16))
    _check(cat, reps_bf16, out_bf16)

    # 4) Tiny-shape fallback (B*A = 6): skips Pallas; XLA fuses the concat.
    small_reps = [[p[:, :3] for p in rep] for rep in reps]
    small_out = jax.block_until_ready(cat(small_reps))
    _check(cat, small_reps, small_out)

    print("KERNEL_OK")
</pallas_src>

<mosaic_0001>
module attributes {stable_mosaic.version = 11 : i64} {
  func.func @kernel(%arg0: i32, %arg1: memref<256x16xf32, #tpu.memory_space<vmem>>, %arg2: memref<256x32xf32, #tpu.memory_space<vmem>>, %arg3: memref<256x24xf32, #tpu.memory_space<vmem>>, %arg4: memref<256x48xf32, #tpu.memory_space<vmem>>, %arg5: memref<256x48xf32, #tpu.memory_space<vmem>>, %arg6: memref<256x72xf32, #tpu.memory_space<vmem>>) attributes {dimension_semantics = [#tpu.dimension_semantics<parallel>], iteration_bounds = array<i64: 4>, scalar_prefetch = 0 : i64, scratch_operands = 0 : i64, tpu.core_type = #tpu.core_type<tc>, window_params = [{transform_indices = @transform_0, window_bounds = array<i64: 256, 16>}, {transform_indices = @transform_1, window_bounds = array<i64: 256, 32>}, {transform_indices = @transform_2, window_bounds = array<i64: 256, 24>}, {transform_indices = @transform_3, window_bounds = array<i64: 256, 48>}, {transform_indices = @transform_4, window_bounds = array<i64: 256, 48>}, {transform_indices = @transform_5, window_bounds = array<i64: 256, 72>}]} {
    %c0 = arith.constant 0 : index
    %c0_0 = arith.constant 0 : index
    %0 = vector.load %arg1[%c0, %c0_0] : memref<256x16xf32, #tpu.memory_space<vmem>>, vector<256x16xf32>
    %c0_1 = arith.constant 0 : index
    %c0_2 = arith.constant 0 : index
    %1 = vector.load %arg5[%c0_1, %c0_2] : memref<256x48xf32, #tpu.memory_space<vmem>>, vector<256x16xf32>
    tpu.vector_store %arg5[%c0_1, %c0_2], %0 {strides = array<i32>} : memref<256x48xf32, #tpu.memory_space<vmem>>, vector<256x16xf32>,
    %c0_3 = arith.constant 0 : index
    %c0_4 = arith.constant 0 : index
    %2 = vector.load %arg2[%c0_3, %c0_4] : memref<256x32xf32, #tpu.memory_space<vmem>>, vector<256x32xf32>
    %c0_5 = arith.constant 0 : index
    %c16 = arith.constant 16 : index
    %3 = vector.load %arg5[%c0_5, %c16] : memref<256x48xf32, #tpu.memory_space<vmem>>, vector<256x32xf32>
    tpu.vector_store %arg5[%c0_5, %c16], %2 {strides = array<i32>} : memref<256x48xf32, #tpu.memory_space<vmem>>, vector<256x32xf32>,
    %c0_6 = arith.constant 0 : index
    %c0_7 = arith.constant 0 : index
    %4 = vector.load %arg3[%c0_6, %c0_7] : memref<256x24xf32, #tpu.memory_space<vmem>>, vector<256x24xf32>
    %c0_8 = arith.constant 0 : index
    %c0_9 = arith.constant 0 : index
    %5 = vector.load %arg6[%c0_8, %c0_9] : memref<256x72xf32, #tpu.memory_space<vmem>>, vector<256x24xf32>
    tpu.vector_store %arg6[%c0_8, %c0_9], %4 {strides = array<i32>} : memref<256x72xf32, #tpu.memory_space<vmem>>, vector<256x24xf32>,
    %c0_10 = arith.constant 0 : index
    %c0_11 = arith.constant 0 : index
    %6 = vector.load %arg4[%c0_10, %c0_11] : memref<256x48xf32, #tpu.memory_space<vmem>>, vector<256x48xf32>
    %c0_12 = arith.constant 0 : index
    %c24 = arith.constant 24 : index
    %7 = vector.load %arg6[%c0_12, %c24] : memref<256x72xf32, #tpu.memory_space<vmem>>, vector<256x48xf32>
    tpu.vector_store %arg6[%c0_12, %c24], %6 {strides = array<i32>} : memref<256x72xf32, #tpu.memory_space<vmem>>, vector<256x48xf32>,
    return
  }
  func.func @transform_0(%arg0: i32) -> (i32, i32) {
    %c0_i32 = arith.constant 0 : i32
    %c0_i32_0 = arith.constant 0 : i32
    return %arg0, %c0_i32 : i32, i32
  }
  func.func @transform_1(%arg0: i32) -> (i32, i32) {
    %c0_i32 = arith.constant 0 : i32
    %c0_i32_0 = arith.constant 0 : i32
    return %arg0, %c0_i32 : i32, i32
  }
  func.func @transform_2(%arg0: i32) -> (i32, i32) {
    %c0_i32 = arith.constant 0 : i32
    %c0_i32_0 = arith.constant 0 : i32
    return %arg0, %c0_i32 : i32, i32
  }
  func.func @transform_3(%arg0: i32) -> (i32, i32) {
    %c0_i32 = arith.constant 0 : i32
    %c0_i32_0 = arith.constant 0 : i32
    return %arg0, %c0_i32 : i32, i32
  }
  func.func @transform_4(%arg0: i32) -> (i32, i32) {
    %c0_i32 = arith.constant 0 : i32
    %c0_i32_0 = arith.constant 0 : i32
    return %arg0, %c0_i32 : i32, i32
  }
  func.func @transform_5(%arg0: i32) -> (i32, i32) {
    %c0_i32 = arith.constant 0 : i32
    %c0_i32_0 = arith.constant 0 : i32
    return %arg0, %c0_i32 : i32, i32
  }
}

</mosaic_0001>

<bundles_post_ra>
// kernel: tpu_custom_call.1
= control target key start
LH: loop header
LB: loop body
LE: loop exit
PB: predicated region body
PF: predicated region fallthrough
CT: control target
= control target key end

     0   :  { %s1019_s18 = smov 0   ;;  %s1516_s0 = inlined_call_operand.vmem [shape: f32[1024,16], index: 0, kind: input, shape index: {}]   ;;  %s1517_s1 = inlined_call_operand.vmem [shape: f32[1024,32], index: 1, kind: input, shape index: {}]   ;;  %s1518_s2 = inlined_call_operand.vmem [shape: f32[1024,24], index: 2, kind: input, shape index: {}]   ;;  %s1519_s3 = inlined_call_operand.vmem [shape: f32[1024,48], index: 3, kind: input, shape index: {}]   ;;  %s1520_s4 = inlined_call_operand.vmem [shape: f32[1024,48], index: 4, kind: output, shape index: {0}]   ;;  %s1521_s5 = inlined_call_operand.vmem [shape: f32[1024,72], index: 5, kind: output, shape index: {1}]  }
   0x1 LB: > { %s950_s19 = sadd.s32 4294967295, %s985_s18   ;;  %p954_p0 = scmp.ge.s32.totalorder %s985_s18, 1  ;;  %s985_s18 = sphi %s1019_s18, %s16_s18  }
   0x2   : > { %p224_p1 = scmp.lt.s32.totalorder %s985_s18, 5 }
   0x4   : > { %p225_p2 = pnand %p954_p0, %p224_p1 }
   0x5   : > { %s955_s20 = sshll.u32 (!%p225_p2), %s950_s19, 5  ;;  %s987_s25 = smov (!%p225_p2), 16  }
   0x6   : > { %228 = sbr.rel (%p225_p2) target bundleno = 255 (0xff), region = 36  ;;  %p273_p3 = scmp.lt.s32.totalorder (!%p225_p2), %s955_s20, 127 }
   0x7   : > { %s988_s16 = smov (!%p225_p2), 24  }
   0xb   : > { %s1523_s20 = smov (!%p273_p3, %s955_s20), 127  ;;  %vm340_vm0 = vcmask 130048   ;;  %vm598_vm1 = vcmask 195584   ;;  %vm533_vm2 = vcmask 392320   ;;  %vm791_vm3 = vcmask 588992  }
   0xc   : > { %s1027_s21 = sshll.u32 %s1523_s20, 3 }
   0xd   : > { %s1033_s24 = scalar_lea.vmem %s1517_s1, %s1027_s21  ;;  %s1061_s28 = scalar_lea.vmem %s1516_s0, %s1027_s21 }
   0xe   : > { %v375_v0 = vld [vmem:[%s1033_s24 + $0x10] sm:$0xff]  ;;  %v373_v1 = vld [vmem:[%s1033_s24] sm:$0xff]  ;;  %v376_v2 = vld [vmem:[%s1033_s24 + $0x18] sm:$0xff]  ;;  %s1067_s6 = scalar_lea.vmem %s1520_s4, %s1027_s21  ;;  %s1197_s9 = scalar_lea.vmem %s1518_s2, %s1027_s21 }
   0xf   : > { %441 = vrot.lane.b32.xlu1 %v375_v0, %s987_s25  ;;  %437 = vrot.lane.b32.xlu0 %v373_v1, %s987_s25  ;;  %v374_v3 = vld [vmem:[%s1033_s24 + $0x8] sm:$0xff]  ;;  %v377_v5 = vld [vmem:[%s1033_s24 + $0x20] sm:$0xff]  ;;  %s1203_s12 = scalar_lea.vmem %s1521_s5, %s1027_s21  ;;  %s1237_s15 = scalar_lea.vmem %s1519_s3, %s1027_s21 }
  0x10   : > { %v378_v4 = vld [vmem:[%s1033_s24 + $0x28] sm:$0xff]  ;;  %v380_v6 = vld [vmem:[%s1033_s24 + $0x38] sm:$0xff]  ;;  %v379_v7 = vld [vmem:[%s1033_s24 + $0x30] sm:$0xff] }
  0x11   : > { %v382_v8 = vld [vmem:[%s1033_s24 + $0x48] sm:$0xff]  ;;  %v381_v9 = vld [vmem:[%s1033_s24 + $0x40] sm:$0xff]  ;;  %v384_v10 = vld [vmem:[%s1033_s24 + $0x58] sm:$0xff] }
  0x12   : > { %v383_v11 = vld [vmem:[%s1033_s24 + $0x50] sm:$0xff]  ;;  %v308_v13 = vld [vmem:[%s1061_s28] sm:$0xff]  ;;  %v386_v14 = vld [vmem:[%s1033_s24 + $0x68] sm:$0xff] }
  0x13   : > { %443 = vrot.lane.b32.xlu1 %v376_v2, %s987_s25  ;;  %439 = vrot.lane.b32.xlu0 %v374_v3, %s987_s25  ;;  %v310_v12 = vld [vmem:[%s1061_s28 + $0x10] sm:$0xff]  ;;  %v385_v15 = vld [vmem:[%s1033_s24 + $0x60] sm:$0xff] }
  0x14   : > { %343 = vst.msk [vmem:[%s1067_s6 + $0x10] sm:$0xff] %vm340_vm0, %v310_v12  ;;  %341 = vst.msk [vmem:[%s1067_s6] sm:$0xff] %vm340_vm0, %v308_v13  ;;  %v311_v16 = vld [vmem:[%s1061_s28 + $0x18] sm:$0xff]  ;;  %v309_v17 = vld [vmem:[%s1061_s28 + $0x8] sm:$0xff] }
  0x15   : > { %344 = vst.msk [vmem:[%s1067_s6 + $0x18] sm:$0xff] %vm340_vm0, %v311_v16  ;;  %v388_v18 = vld [vmem:[%s1033_s24 + $0x78] sm:$0xff]  ;;  %342 = vst.msk [vmem:[%s1067_s6 + $0x8] sm:$0xff] %vm340_vm0, %v309_v17  ;;  %v313_v19 = vld [vmem:[%s1061_s28 + $0x28] sm:$0xff] }
  0x16   : > { %v312_v20 = vld [vmem:[%s1061_s28 + $0x20] sm:$0xff]  ;;  %v387_v21 = vld [vmem:[%s1033_s24 + $0x70] sm:$0xff]  ;;  %346 = vst.msk [vmem:[%s1067_s6 + $0x28] sm:$0xff] %vm340_vm0, %v313_v19  ;;  %v315_v22 = vld [vmem:[%s1061_s28 + $0x38] sm:$0xff] }
  0x17   : > { %447 = vrot.lane.b32.xlu1 %v378_v4, %s987_s25  ;;  %445 = vrot.lane.b32.xlu0 %v377_v5, %s987_s25  ;;  %345 = vst.msk [vmem:[%s1067_s6 + $0x20] sm:$0xff] %vm340_vm0, %v312_v20  ;;  %348 = vst.msk [vmem:[%s1067_s6 + $0x38] sm:$0xff] %vm340_vm0, %v315_v22 }
  0x18   : > { %v314_v23 = vld [vmem:[%s1061_s28 + $0x30] sm:$0xff]  ;;  %v317_v24 = vld [vmem:[%s1061_s28 + $0x48] sm:$0xff]  ;;  %v316_v25 = vld [vmem:[%s1061_s28 + $0x40] sm:$0xff] }
  0x19   : > { %347 = vst.msk [vmem:[%s1067_s6 + $0x30] sm:$0xff] %vm340_vm0, %v314_v23  ;;  %350 = vst.msk [vmem:[%s1067_s6 + $0x48] sm:$0xff] %vm340_vm0, %v317_v24  ;;  %v319_v26 = vld [vmem:[%s1061_s28 + $0x58] sm:$0xff]  ;;  %v318_v27 = vld [vmem:[%s1061_s28 + $0x50] sm:$0xff] }
  0x1a   : > { %349 = vst.msk [vmem:[%s1067_s6 + $0x40] sm:$0xff] %vm340_vm0, %v316_v25  ;;  %v321_v28 = vld [vmem:[%s1061_s28 + $0x68] sm:$0xff]  ;;  %v389_v30 = vld [vmem:[%s1033_s24 + $0x80] sm:$0xff]  ;;  %352 = vst.msk [vmem:[%s1067_s6 + $0x58] sm:$0xff] %vm340_vm0, %v319_v26 }
  0x1b   : > { %451 = vrot.lane.b32.xlu1 %v380_v6, %s987_s25  ;;  %449 = vrot.lane.b32.xlu0 %v379_v7, %s987_s25  ;;  %v390_v29 = vld [vmem:[%s1033_s24 + $0x88] sm:$0xff]  ;;  %351 = vst.msk [vmem:[%s1067_s6 + $0x50] sm:$0xff] %vm340_vm0, %v318_v27 }
  0x1c   : > { %354 = vst.msk [vmem:[%s1067_s6 + $0x68] sm:$0xff] %vm340_vm0, %v321_v28  ;;  %v320_v31 = vld [vmem:[%s1061_s28 + $0x60] sm:$0xff]  ;;  %v323_v32 = vld [vmem:[%s1061_s28 + $0x78] sm:$0xff]  ;;  %v322_v33 = vld [vmem:[%s1061_s28 + $0x70] sm:$0xff] }
  0x1d   : > { %353 = vst.msk [vmem:[%s1067_s6 + $0x60] sm:$0xff] %vm340_vm0, %v320_v31  ;;  %356 = vst.msk [vmem:[%s1067_s6 + $0x78] sm:$0xff] %vm340_vm0, %v323_v32  ;;  %v325_v34 = vld [vmem:[%s1061_s28 + $0x88] sm:$0xff]  ;;  %v324_v35 = vld [vmem:[%s1061_s28 + $0x80] sm:$0xff] }
  0x1e   : > { %355 = vst.msk [vmem:[%s1067_s6 + $0x70] sm:$0xff] %vm340_vm0, %v322_v33  ;;  %358 = vst.msk [vmem:[%s1067_s6 + $0x88] sm:$0xff] %vm340_vm0, %v325_v34  ;;  %v327_v36 = vld [vmem:[%s1061_s28 + $0x98] sm:$0xff]  ;;  %v326_v37 = vld [vmem:[%s1061_s28 + $0x90] sm:$0xff] }
  0x1f   : > { %455 = vrot.lane.b32.xlu1 %v382_v8, %s987_s25  ;;  %453 = vrot.lane.b32.xlu0 %v381_v9, %s987_s25  ;;  %357 = vst.msk [vmem:[%s1067_s6 + $0x80] sm:$0xff] %vm340_vm0, %v324_v35  ;;  %v329_v38 = vld [vmem:[%s1061_s28 + $0xa8] sm:$0xff] }
  0x20   : > { %360 = vst.msk [vmem:[%s1067_s6 + $0x98] sm:$0xff] %vm340_vm0, %v327_v36  ;;  %359 = vst.msk [vmem:[%s1067_s6 + $0x90] sm:$0xff] %vm340_vm0, %v326_v37  ;;  %v328_v39 = vld [vmem:[%s1061_s28 + $0xa0] sm:$0xff]  ;;  %v331_v40 = vld [vmem:[%s1061_s28 + $0xb8] sm:$0xff] }
  0x21   : > { %362 = vst.msk [vmem:[%s1067_s6 + $0xa8] sm:$0xff] %vm340_vm0, %v329_v38  ;;  %v330_v41 = vld [vmem:[%s1061_s28 + $0xb0] sm:$0xff]  ;;  %361 = vst.msk [vmem:[%s1067_s6 + $0xa0] sm:$0xff] %vm340_vm0, %v328_v39  ;;  %v392_v42 = vld [vmem:[%s1033_s24 + $0x98] sm:$0xff] }
  0x22   : > { %364 = vst.msk [vmem:[%s1067_s6 + $0xb8] sm:$0xff] %vm340_vm0, %v331_v40  ;;  %363 = vst.msk [vmem:[%s1067_s6 + $0xb0] sm:$0xff] %vm340_vm0, %v330_v41  ;;  %v391_v43 = vld [vmem:[%s1033_s24 + $0x90] sm:$0xff]  ;;  %v333_v44 = vld [vmem:[%s1061_s28 + $0xc8] sm:$0xff] }
  0x23   : > { %459 = vrot.lane.b32.xlu1 %v384_v10, %s987_s25  ;;  %457 = vrot.lane.b32.xlu0 %v383_v11, %s987_s25  ;;  %v332_v45 = vld [vmem:[%s1061_s28 + $0xc0] sm:$0xff]  ;;  %366 = vst.msk [vmem:[%s1067_s6 + $0xc8] sm:$0xff] %vm340_vm0, %v333_v44 }
  0x24   : > { %365 = vst.msk [vmem:[%s1067_s6 + $0xc0] sm:$0xff] %vm340_vm0, %v332_v45  ;;  %v394_v46 = vld [vmem:[%s1033_s24 + $0xa8] sm:$0xff]  ;;  %v393_v47 = vld [vmem:[%s1033_s24 + $0xa0] sm:$0xff]  ;;  %v335_v48 = vld [vmem:[%s1061_s28 + $0xd8] sm:$0xff] }
  0x25   : > { %v334_v49 = vld [vmem:[%s1061_s28 + $0xd0] sm:$0xff]  ;;  %368 = vst.msk [vmem:[%s1067_s6 + $0xd8] sm:$0xff] %vm340_vm0, %v335_v48  ;;  %v396_v50 = vld [vmem:[%s1033_s24 + $0xb8] sm:$0xff]  ;;  %v337_v52 = vld [vmem:[%s1061_s28 + $0xe8] sm:$0xff] }
  0x26   : > { %367 = vst.msk [vmem:[%s1067_s6 + $0xd0] sm:$0xff] %vm340_vm0, %v334_v49  ;;  %v395_v51 = vld [vmem:[%s1033_s24 + $0xb0] sm:$0xff]  ;;  %v336_v53 = vld [vmem:[%s1061_s28 + $0xe0] sm:$0xff]  ;;  %370 = vst.msk [vmem:[%s1067_s6 + $0xe8] sm:$0xff] %vm340_vm0, %v337_v52 }
  0x27   : > { %463 = vrot.lane.b32.xlu1 %v386_v14, %s987_s25  ;;  %461 = vrot.lane.b32.xlu0 %v385_v15, %s987_s25  ;;  %369 = vst.msk [vmem:[%s1067_s6 + $0xe0] sm:$0xff] %vm340_vm0, %v336_v53  ;;  %v398_v54 = vld [vmem:[%s1033_s24 + $0xc8] sm:$0xff] }
  0x28   : > { %v397_v55 = vld [vmem:[%s1033_s24 + $0xc0] sm:$0xff]  ;;  %v339_v56 = vld [vmem:[%s1061_s28 + $0xf8] sm:$0xff]  ;;  %v338_v57 = vld [vmem:[%s1061_s28 + $0xf0] sm:$0xff] }
  0x29   : > { %372 = vst.msk [vmem:[%s1067_s6 + $0xf8] sm:$0xff] %vm340_vm0, %v339_v56  ;;  %371 = vst.msk [vmem:[%s1067_s6 + $0xf0] sm:$0xff] %vm340_vm0, %v338_v57  ;;  %v567_v58 = vld [vmem:[%s1197_s9 + $0x8] sm:$0xff]  ;;  %v400_v59 = vld [vmem:[%s1033_s24 + $0xd8] sm:$0xff] }
  0x2a   : > { %v399_v60 = vld [vmem:[%s1033_s24 + $0xd0] sm:$0xff]  ;;  %600 = vst.msk [vmem:[%s1203_s12 + $0x8] sm:$0xff] %vm598_vm1, %v567_v58  ;;  %v566_v61 = vld [vmem:[%s1197_s9] sm:$0xff]  ;;  %v569_v62 = vld [vmem:[%s1197_s9 + $0x18] sm:$0xff] }
  0x2b   : > { %467 = vrot.lane.b32.xlu1 %v388_v18, %s987_s25  ;;  %465 = vrot.lane.b32.xlu0 %v387_v21, %s987_s25  ;;  %599 = vst.msk [vmem:[%s1203_s12] sm:$0xff] %vm598_vm1, %v566_v61  ;;  %602 = vst.msk [vmem:[%s1203_s12 + $0x18] sm:$0xff] %vm598_vm1, %v569_v62 }
  0x2c   : > { %v402_v63 = vld [vmem:[%s1033_s24 + $0xe8] sm:$0xff]  ;;  %v401_v0 = vld [vmem:[%s1033_s24 + $0xe0] sm:$0xff]  ;;  %v568_v1 = vld [vmem:[%s1197_s9 + $0x10] sm:$0xff] }
  0x2d   : > { %601 = vst.msk [vmem:[%s1203_s12 + $0x10] sm:$0xff] %vm598_vm1, %v568_v1  ;;  %v571_v2 = vld [vmem:[%s1197_s9 + $0x28] sm:$0xff]  ;;  %v404_v3 = vld [vmem:[%s1033_s24 + $0xf8] sm:$0xff]  ;;  %v403_v4 = vld [vmem:[%s1033_s24 + $0xf0] sm:$0xff] }
  0x2e   : > { %604 = vst.msk [vmem:[%s1203_s12 + $0x28] sm:$0xff] %vm598_vm1, %v571_v2  ;;  %v570_v5 = vld [vmem:[%s1197_s9 + $0x20] sm:$0xff]  ;;  %v573_v6 = vld [vmem:[%s1197_s9 + $0x38] sm:$0xff]  ;;  %v632_v7 = vld [vmem:[%s1237_s15 + $0x8] sm:$0xff] }
  0x2f   : > { %471 = vrot.lane.b32.xlu1 %v390_v29, %s987_s25  ;;  %469 = vrot.lane.b32.xlu0 %v389_v30, %s987_s25  ;;  %603 = vst.msk [vmem:[%s1203_s12 + $0x20] sm:$0xff] %vm598_vm1, %v570_v5  ;;  %606 = vst.msk [vmem:[%s1203_s12 + $0x38] sm:$0xff] %vm598_vm1, %v573_v6 }
  0x30   : > { %v631_v8 = vld [vmem:[%s1237_s15] sm:$0xff]  ;;  %v572_v9 = vld [vmem:[%s1197_s9 + $0x30] sm:$0xff]  ;;  %v575_v10 = vld [vmem:[%s1197_s9 + $0x48] sm:$0xff] }
  0x31   : > { %605 = vst.msk [vmem:[%s1203_s12 + $0x30] sm:$0xff] %vm598_vm1, %v572_v9  ;;  %608 = vst.msk [vmem:[%s1203_s12 + $0x48] sm:$0xff] %vm598_vm1, %v575_v10  ;;  %v634_v11 = vld [vmem:[%s1237_s15 + $0x18] sm:$0xff]  ;;  %v633_v12 = vld [vmem:[%s1237_s15 + $0x10] sm:$0xff] }
  0x32   : > { %v574_v13 = vld [vmem:[%s1197_s9 + $0x40] sm:$0xff]  ;;  %v577_v14 = vld [vmem:[%s1197_s9 + $0x58] sm:$0xff]  ;;  %v636_v15 = vld [vmem:[%s1237_s15 + $0x28] sm:$0xff] }
  0x33   : > { %475 = vrot.lane.b32.xlu1 %v392_v42, %s987_s25  ;;  %473 = vrot.lane.b32.xlu0 %v391_v43, %s987_s25  ;;  %607 = vst.msk [vmem:[%s1203_s12 + $0x40] sm:$0xff] %vm598_vm1, %v574_v13  ;;  %610 = vst.msk [vmem:[%s1203_s12 + $0x58] sm:$0xff] %vm598_vm1, %v577_v14 }
  0x34   : > { %v635_v16 = vld [vmem:[%s1237_s15 + $0x20] sm:$0xff]  ;;  %v576_v17 = vld [vmem:[%s1197_s9 + $0x50] sm:$0xff]  ;;  %v579_v18 = vld [vmem:[%s1197_s9 + $0x68] sm:$0xff] }
  0x35   : > { %609 = vst.msk [vmem:[%s1203_s12 + $0x50] sm:$0xff] %vm598_vm1, %v576_v17  ;;  %612 = vst.msk [vmem:[%s1203_s12 + $0x68] sm:$0xff] %vm598_vm1, %v579_v18  ;;  %v638_v19 = vld [vmem:[%s1237_s15 + $0x38] sm:$0xff]  ;;  %v637_v20 = vld [vmem:[%s1237_s15 + $0x30] sm:$0xff] }
  0x36   : > { %v578_v21 = vld [vmem:[%s1197_s9 + $0x60] sm:$0xff]  ;;  %v581_v22 = vld [vmem:[%s1197_s9 + $0x78] sm:$0xff]  ;;  %v640_v23 = vld [vmem:[%s1237_s15 + $0x48] sm:$0xff] }
  0x37   : > { %479 = vrot.lane.b32.xlu1 %v394_v46, %s987_s25  ;;  %477 = vrot.lane.b32.xlu0 %v393_v47, %s987_s25  ;;  %611 = vst.msk [vmem:[%s1203_s12 + $0x60] sm:$0xff] %vm598_vm1, %v578_v21  ;;  %614 = vst.msk [vmem:[%s1203_s12 + $0x78] sm:$0xff] %vm598_vm1, %v581_v22 }
  0x38   : > { %v639_v24 = vld [vmem:[%s1237_s15 + $0x40] sm:$0xff]  ;;  %v580_v25 = vld [vmem:[%s1197_s9 + $0x70] sm:$0xff]  ;;  %v583_v26 = vld [vmem:[%s1197_s9 + $0x88] sm:$0xff] }
  0x39   : > { %613 = vst.msk [vmem:[%s1203_s12 + $0x70] sm:$0xff] %vm598_vm1, %v580_v25  ;;  %616 = vst.msk [vmem:[%s1203_s12 + $0x88] sm:$0xff] %vm598_vm1, %v583_v26  ;;  %v642_v27 = vld [vmem:[%s1237_s15 + $0x58] sm:$0xff]  ;;  %v641_v28 = vld [vmem:[%s1237_s15 + $0x50] sm:$0xff] }
  0x3a   : > { %v582_v29 = vld [vmem:[%s1197_s9 + $0x80] sm:$0xff]  ;;  %v585_v30 = vld [vmem:[%s1197_s9 + $0x98] sm:$0xff]  ;;  %v644_v31 = vld [vmem:[%s1237_s15 + $0x68] sm:$0xff] }
  0x3b   : > { %483 = vrot.lane.b32.xlu1 %v396_v50, %s987_s25  ;;  %481 = vrot.lane.b32.xlu0 %v395_v51, %s987_s25  ;;  %615 = vst.msk [vmem:[%s1203_s12 + $0x80] sm:$0xff] %vm598_vm1, %v582_v29  ;;  %618 = vst.msk [vmem:[%s1203_s12 + $0x98] sm:$0xff] %vm598_vm1, %v585_v30 }
  0x3c   : > { %v643_v32 = vld [vmem:[%s1237_s15 + $0x60] sm:$0xff]  ;;  %v584_v33 = vld [vmem:[%s1197_s9 + $0x90] sm:$0xff]  ;;  %v587_v34 = vld [vmem:[%s1197_s9 + $0xa8] sm:$0xff] }
  0x3d   : > { %617 = vst.msk [vmem:[%s1203_s12 + $0x90] sm:$0xff] %vm598_vm1, %v584_v33  ;;  %620 = vst.msk [vmem:[%s1203_s12 + $0xa8] sm:$0xff] %vm598_vm1, %v587_v34  ;;  %v646_v35 = vld [vmem:[%s1237_s15 + $0x78] sm:$0xff]  ;;  %v645_v36 = vld [vmem:[%s1237_s15 + $0x70] sm:$0xff] }
  0x3e   : > { %v586_v37 = vld [vmem:[%s1197_s9 + $0xa0] sm:$0xff]  ;;  %v589_v38 = vld [vmem:[%s1197_s9 + $0xb8] sm:$0xff]  ;;  %v648_v39 = vld [vmem:[%s1237_s15 + $0x88] sm:$0xff] }
  0x3f   : > { %487 = vrot.lane.b32.xlu1 %v398_v54, %s987_s25  ;;  %485 = vrot.lane.b32.xlu0 %v397_v55, %s987_s25  ;;  %619 = vst.msk [vmem:[%s1203_s12 + $0xa0] sm:$0xff] %vm598_vm1, %v586_v37  ;;  %622 = vst.msk [vmem:[%s1203_s12 + $0xb8] sm:$0xff] %vm598_vm1, %v589_v38 }
  0x40   : > { %v647_v40 = vld [vmem:[%s1237_s15 + $0x80] sm:$0xff]  ;;  %v588_v41 = vld [vmem:[%s1197_s9 + $0xb0] sm:$0xff]  ;;  %v591_v42 = vld [vmem:[%s1197_s9 + $0xc8] sm:$0xff] }
  0x41   : > { %621 = vst.msk [vmem:[%s1203_s12 + $0xb0] sm:$0xff] %vm598_vm1, %v588_v41  ;;  %624 = vst.msk [vmem:[%s1203_s12 + $0xc8] sm:$0xff] %vm598_vm1, %v591_v42  ;;  %v650_v43 = vld [vmem:[%s1237_s15 + $0x98] sm:$0xff]  ;;  %v649_v44 = vld [vmem:[%s1237_s15 + $0x90] sm:$0xff] }
  0x42   : > { %v590_v45 = vld [vmem:[%s1197_s9 + $0xc0] sm:$0xff]  ;;  %v593_v46 = vld [vmem:[%s1197_s9 + $0xd8] sm:$0xff]  ;;  %v652_v47 = vld [vmem:[%s1237_s15 + $0xa8] sm:$0xff] }
  0x43   : > { %491 = vrot.lane.b32.xlu1 %v400_v59, %s987_s25  ;;  %489 = vrot.lane.b32.xlu0 %v399_v60, %s987_s25  ;;  %623 = vst.msk [vmem:[%s1203_s12 + $0xc0] sm:$0xff] %vm598_vm1, %v590_v45  ;;  %626 = vst.msk [vmem:[%s1203_s12 + $0xd8] sm:$0xff] %vm598_vm1, %v593_v46 }
  0x44   : > { %v651_v48 = vld [vmem:[%s1237_s15 + $0xa0] sm:$0xff]  ;;  %v592_v49 = vld [vmem:[%s1197_s9 + $0xd0] sm:$0xff]  ;;  %v595_v50 = vld [vmem:[%s1197_s9 + $0xe8] sm:$0xff] }
  0x45   : > { %625 = vst.msk [vmem:[%s1203_s12 + $0xd0] sm:$0xff] %vm598_vm1, %v592_v49  ;;  %628 = vst.msk [vmem:[%s1203_s12 + $0xe8] sm:$0xff] %vm598_vm1, %v595_v50  ;;  %v654_v51 = vld [vmem:[%s1237_s15 + $0xb8] sm:$0xff]  ;;  %v653_v52 = vld [vmem:[%s1237_s15 + $0xb0] sm:$0xff] }
  0x46   : > { %v594_v53 = vld [vmem:[%s1197_s9 + $0xe0] sm:$0xff]  ;;  %v597_v54 = vld [vmem:[%s1197_s9 + $0xf8] sm:$0xff]  ;;  %v656_v55 = vld [vmem:[%s1237_s15 + $0xc8] sm:$0xff] }
  0x47   : > { %495 = vrot.lane.b32.xlu1 %v402_v63, %s987_s25  ;;  %493 = vrot.lane.b32.xlu0 %v401_v0, %s987_s25  ;;  %627 = vst.msk [vmem:[%s1203_s12 + $0xe0] sm:$0xff] %vm598_vm1, %v594_v53  ;;  %630 = vst.msk [vmem:[%s1203_s12 + $0xf8] sm:$0xff] %vm598_vm1, %v597_v54 }
  0x48   : > { %v655_v56 = vld [vmem:[%s1237_s15 + $0xc0] sm:$0xff]  ;;  %v596_v57 = vld [vmem:[%s1197_s9 + $0xf0] sm:$0xff]  ;;  %v658_v58 = vld [vmem:[%s1237_s15 + $0xd8] sm:$0xff] }
  0x49   : > { %629 = vst.msk [vmem:[%s1203_s12 + $0xf0] sm:$0xff] %vm598_vm1, %v596_v57  ;;  %v657_v59 = vld [vmem:[%s1237_s15 + $0xd0] sm:$0xff]  ;;  %v660_v62 = vld [vmem:[%s1237_s15 + $0xe8] sm:$0xff]  ;;  %v659_v63 = vld [vmem:[%s1237_s15 + $0xe0] sm:$0xff] }
  0x4a   : > { %v662_v2 = vld [vmem:[%s1237_s15 + $0xf8] sm:$0xff] }
  0x4b   : > { %499 = vrot.lane.b32.xlu1 %v404_v3, %s987_s25  ;;  %497 = vrot.lane.b32.xlu0 %v403_v4, %s987_s25  ;;  %v661_v3 = vld [vmem:[%s1237_s15 + $0xf0] sm:$0xff] }
  0x4f   : > { %697 = vrot.lane.b32.xlu1 %v632_v7, %s988_s16  ;;  %695 = vrot.lane.b32.xlu0 %v631_v8, %s988_s16 }
  0x53   : > { %701 = vrot.lane.b32.xlu1 %v634_v11, %s988_s16  ;;  %699 = vrot.lane.b32.xlu0 %v633_v12, %s988_s16 }
  0x57   : > { %705 = vrot.lane.b32.xlu1 %v636_v15, %s988_s16  ;;  %703 = vrot.lane.b32.xlu0 %v635_v16, %s988_s16 }
  0x5b   : > { %709 = vrot.lane.b32.xlu1 %v638_v19, %s988_s16  ;;  %707 = vrot.lane.b32.xlu0 %v637_v20, %s988_s16 }
  0x5f   : > { %713 = vrot.lane.b32.xlu1 %v640_v23, %s988_s16  ;;  %711 = vrot.lane.b32.xlu0 %v639_v24, %s988_s16 }
  0x63   : > { %717 = vrot.lane.b32.xlu1 %v642_v27, %s988_s16  ;;  %715 = vrot.lane.b32.xlu0 %v641_v28, %s988_s16 }
  0x67   : > { %721 = vrot.lane.b32.xlu1 %v644_v31, %s988_s16  ;;  %719 = vrot.lane.b32.xlu0 %v643_v32, %s988_s16 }
  0x6b   : > { %725 = vrot.lane.b32.xlu1 %v646_v35, %s988_s16  ;;  %723 = vrot.lane.b32.xlu0 %v645_v36, %s988_s16 }
  0x6f   : > { %729 = vrot.lane.b32.xlu1 %v648_v39, %s988_s16  ;;  %727 = vrot.lane.b32.xlu0 %v647_v40, %s988_s16 }
  0x73   : > { %733 = vrot.lane.b32.xlu1 %v650_v43, %s988_s16  ;;  %731 = vrot.lane.b32.xlu0 %v649_v44, %s988_s16 }
  0x77   : > { %737 = vrot.lane.b32.xlu1 %v652_v47, %s988_s16  ;;  %735 = vrot.lane.b32.xlu0 %v651_v48, %s988_s16 }
  0x7b   : > { %741 = vrot.lane.b32.xlu1 %v654_v51, %s988_s16  ;;  %739 = vrot.lane.b32.xlu0 %v653_v52, %s988_s16 }
  0x7f   : > { %745 = vrot.lane.b32.xlu1 %v656_v55, %s988_s16  ;;  %743 = vrot.lane.b32.xlu0 %v655_v56, %s988_s16 }
  0x81   : > { %v442_v60 = vpop.permute.xlu1 %441  ;;  %v438_v61 = vpop.permute.xlu0 %437 }
  0x82   : > { %536 = vst.msk [vmem:[%s1067_s6 + $0x10] sm:$0xff] %vm533_vm2, %v442_v60  ;;  %534 = vst.msk [vmem:[%s1067_s6] sm:$0xff] %vm533_vm2, %v438_v61 }
  0x83   : > { %749 = vrot.lane.b32.xlu1 %v658_v58, %s988_s16  ;;  %747 = vrot.lane.b32.xlu0 %v657_v59, %s988_s16 }
  0x85   : > { %v444_v0 = vpop.permute.xlu1 %443  ;;  %v440_v1 = vpop.permute.xlu0 %439 }
  0x86   : > { %537 = vst.msk [vmem:[%s1067_s6 + $0x18] sm:$0xff] %vm533_vm2, %v444_v0  ;;  %535 = vst.msk [vmem:[%s1067_s6 + $0x8] sm:$0xff] %vm533_vm2, %v440_v1 }
  0x87   : > { %753 = vrot.lane.b32.xlu1 %v660_v62, %s988_s16  ;;  %751 = vrot.lane.b32.xlu0 %v659_v63, %s988_s16 }
  0x89   : > { %v448_v4 = vpop.permute.xlu1 %447  ;;  %v446_v5 = vpop.permute.xlu0 %445 }
  0x8a   : > { %539 = vst.msk [vmem:[%s1067_s6 + $0x28] sm:$0xff] %vm533_vm2, %v448_v4  ;;  %538 = vst.msk [vmem:[%s1067_s6 + $0x20] sm:$0xff] %vm533_vm2, %v446_v5 }
  0x8b   : > { %757 = vrot.lane.b32.xlu1 %v662_v2, %s988_s16  ;;  %755 = vrot.lane.b32.xlu0 %v661_v3, %s988_s16 }
  0x8d   : > { %v452_v6 = vpop.permute.xlu1 %451  ;;  %v450_v7 = vpop.permute.xlu0 %449 }
  0x8e   : > { %541 = vst.msk [vmem:[%s1067_s6 + $0x38] sm:$0xff] %vm533_vm2, %v452_v6  ;;  %540 = vst.msk [vmem:[%s1067_s6 + $0x30] sm:$0xff] %vm533_vm2, %v450_v7 }
  0x91   : > { %v456_v8 = vpop.permute.xlu1 %455  ;;  %v454_v9 = vpop.permute.xlu0 %453 }
  0x92   : > { %543 = vst.msk [vmem:[%s1067_s6 + $0x48] sm:$0xff] %vm533_vm2, %v456_v8  ;;  %542 = vst.msk [vmem:[%s1067_s6 + $0x40] sm:$0xff] %vm533_vm2, %v454_v9 }
  0x95   : > { %v460_v10 = vpop.permute.xlu1 %459  ;;  %v458_v11 = vpop.permute.xlu0 %457 }
  0x96   : > { %545 = vst.msk [vmem:[%s1067_s6 + $0x58] sm:$0xff] %vm533_vm2, %v460_v10  ;;  %544 = vst.msk [vmem:[%s1067_s6 + $0x50] sm:$0xff] %vm533_vm2, %v458_v11 }
  0x99   : > { %v464_v12 = vpop.permute.xlu1 %463  ;;  %v462_v13 = vpop.permute.xlu0 %461 }
  0x9a   : > { %547 = vst.msk [vmem:[%s1067_s6 + $0x68] sm:$0xff] %vm533_vm2, %v464_v12  ;;  %546 = vst.msk [vmem:[%s1067_s6 + $0x60] sm:$0xff] %vm533_vm2, %v462_v13 }
  0x9d   : > { %v468_v14 = vpop.permute.xlu1 %467  ;;  %v466_v15 = vpop.permute.xlu0 %465 }
  0x9e   : > { %549 = vst.msk [vmem:[%s1067_s6 + $0x78] sm:$0xff] %vm533_vm2, %v468_v14  ;;  %548 = vst.msk [vmem:[%s1067_s6 + $0x70] sm:$0xff] %vm533_vm2, %v466_v15 }
  0xa1   : > { %v472_v16 = vpop.permute.xlu1 %471  ;;  %v470_v17 = vpop.permute.xlu0 %469 }
  0xa2   : > { %551 = vst.msk [vmem:[%s1067_s6 + $0x88] sm:$0xff] %vm533_vm2, %v472_v16  ;;  %550 = vst.msk [vmem:[%s1067_s6 + $0x80] sm:$0xff] %vm533_vm2, %v470_v17 }
  0xa5   : > { %v476_v18 = vpop.permute.xlu1 %475  ;;  %v474_v19 = vpop.permute.xlu0 %473 }
  0xa6   : > { %553 = vst.msk [vmem:[%s1067_s6 + $0x98] sm:$0xff] %vm533_vm2, %v476_v18  ;;  %552 = vst.msk [vmem:[%s1067_s6 + $0x90] sm:$0xff] %vm533_vm2, %v474_v19 }
  0xa9   : > { %v480_v20 = vpop.permute.xlu1 %479  ;;  %v478_v21 = vpop.permute.xlu0 %477 }
  0xaa   : > { %555 = vst.msk [vmem:[%s1067_s6 + $0xa8] sm:$0xff] %vm533_vm2, %v480_v20  ;;  %554 = vst.msk [vmem:[%s1067_s6 + $0xa0] sm:$0xff] %vm533_vm2, %v478_v21 }
  0xad   : > { %v484_v22 = vpop.permute.xlu1 %483  ;;  %v482_v23 = vpop.permute.xlu0 %481 }
  0xae   : > { %557 = vst.msk [vmem:[%s1067_s6 + $0xb8] sm:$0xff] %vm533_vm2, %v484_v22  ;;  %556 = vst.msk [vmem:[%s1067_s6 + $0xb0] sm:$0xff] %vm533_vm2, %v482_v23 }
  0xb1   : > { %v488_v24 = vpop.permute.xlu1 %487  ;;  %v486_v25 = vpop.permute.xlu0 %485 }
  0xb2   : > { %559 = vst.msk [vmem:[%s1067_s6 + $0xc8] sm:$0xff] %vm533_vm2, %v488_v24  ;;  %558 = vst.msk [vmem:[%s1067_s6 + $0xc0] sm:$0xff] %vm533_vm2, %v486_v25 }
  0xb5   : > { %v492_v26 = vpop.permute.xlu1 %491  ;;  %v490_v27 = vpop.permute.xlu0 %489 }
  0xb6   : > { %561 = vst.msk [vmem:[%s1067_s6 + $0xd8] sm:$0xff] %vm533_vm2, %v492_v26  ;;  %560 = vst.msk [vmem:[%s1067_s6 + $0xd0] sm:$0xff] %vm533_vm2, %v490_v27 }
  0xb9   : > { %v496_v28 = vpop.permute.xlu1 %495  ;;  %v494_v29 = vpop.permute.xlu0 %493 }
  0xba   : > { %563 = vst.msk [vmem:[%s1067_s6 + $0xe8] sm:$0xff] %vm533_vm2, %v496_v28  ;;  %562 = vst.msk [vmem:[%s1067_s6 + $0xe0] sm:$0xff] %vm533_vm2, %v494_v29 }
  0xbd   : > { %v500_v30 = vpop.permute.xlu1 %499  ;;  %v498_v31 = vpop.permute.xlu0 %497 }
  0xbe   : > { %565 = vst.msk [vmem:[%s1067_s6 + $0xf8] sm:$0xff] %vm533_vm2, %v500_v30  ;;  %564 = vst.msk [vmem:[%s1067_s6 + $0xf0] sm:$0xff] %vm533_vm2, %v498_v31 }
  0xc1   : > { %v698_v32 = vpop.permute.xlu1 %697  ;;  %v696_v33 = vpop.permute.xlu0 %695 }
  0xc2   : > { %793 = vst.msk [vmem:[%s1203_s12 + $0x8] sm:$0xff] %vm791_vm3, %v698_v32  ;;  %792 = vst.msk [vmem:[%s1203_s12] sm:$0xff] %vm791_vm3, %v696_v33 }
  0xc5   : > { %v702_v34 = vpop.permute.xlu1 %701  ;;  %v700_v35 = vpop.permute.xlu0 %699 }
  0xc6   : > { %795 = vst.msk [vmem:[%s1203_s12 + $0x18] sm:$0xff] %vm791_vm3, %v702_v34  ;;  %794 = vst.msk [vmem:[%s1203_s12 + $0x10] sm:$0xff] %vm791_vm3, %v700_v35 }
  0xc9   : > { %v706_v36 = vpop.permute.xlu1 %705  ;;  %v704_v37 = vpop.permute.xlu0 %703 }
  0xca   : > { %797 = vst.msk [vmem:[%s1203_s12 + $0x28] sm:$0xff] %vm791_vm3, %v706_v36  ;;  %796 = vst.msk [vmem:[%s1203_s12 + $0x20] sm:$0xff] %vm791_vm3, %v704_v37 }
  0xcd   : > { %v710_v38 = vpop.permute.xlu1 %709  ;;  %v708_v39 = vpop.permute.xlu0 %707 }
  0xce   : > { %799 = vst.msk [vmem:[%s1203_s12 + $0x38] sm:$0xff] %vm791_vm3, %v710_v38  ;;  %798 = vst.msk [vmem:[%s1203_s12 + $0x30] sm:$0xff] %vm791_vm3, %v708_v39 }
  0xd1   : > { %v714_v40 = vpop.permute.xlu1 %713  ;;  %v712_v41 = vpop.permute.xlu0 %711 }
  0xd2   : > { %801 = vst.msk [vmem:[%s1203_s12 + $0x48] sm:$0xff] %vm791_vm3, %v714_v40  ;;  %800 = vst.msk [vmem:[%s1203_s12 + $0x40] sm:$0xff] %vm791_vm3, %v712_v41 }
  0xd5   : > { %v718_v42 = vpop.permute.xlu1 %717  ;;  %v716_v43 = vpop.permute.xlu0 %715 }
  0xd6   : > { %803 = vst.msk [vmem:[%s1203_s12 + $0x58] sm:$0xff] %vm791_vm3, %v718_v42  ;;  %802 = vst.msk [vmem:[%s1203_s12 + $0x50] sm:$0xff] %vm791_vm3, %v716_v43 }
  0xd9   : > { %v722_v44 = vpop.permute.xlu1 %721  ;;  %v720_v45 = vpop.permute.xlu0 %719 }
  0xda   : > { %805 = vst.msk [vmem:[%s1203_s12 + $0x68] sm:$0xff] %vm791_vm3, %v722_v44  ;;  %804 = vst.msk [vmem:[%s1203_s12 + $0x60] sm:$0xff] %vm791_vm3, %v720_v45 }
  0xdd   : > { %v726_v46 = vpop.permute.xlu1 %725  ;;  %v724_v47 = vpop.permute.xlu0 %723 }
  0xde   : > { %807 = vst.msk [vmem:[%s1203_s12 + $0x78] sm:$0xff] %vm791_vm3, %v726_v46  ;;  %806 = vst.msk [vmem:[%s1203_s12 + $0x70] sm:$0xff] %vm791_vm3, %v724_v47 }
  0xe1   : > { %v730_v48 = vpop.permute.xlu1 %729  ;;  %v728_v49 = vpop.permute.xlu0 %727 }
  0xe2   : > { %809 = vst.msk [vmem:[%s1203_s12 + $0x88] sm:$0xff] %vm791_vm3, %v730_v48  ;;  %808 = vst.msk [vmem:[%s1203_s12 + $0x80] sm:$0xff] %vm791_vm3, %v728_v49 }
  0xe5   : > { %v734_v50 = vpop.permute.xlu1 %733  ;;  %v732_v51 = vpop.permute.xlu0 %731 }
  0xe6   : > { %811 = vst.msk [vmem:[%s1203_s12 + $0x98] sm:$0xff] %vm791_vm3, %v734_v50  ;;  %810 = vst.msk [vmem:[%s1203_s12 + $0x90] sm:$0xff] %vm791_vm3, %v732_v51 }
  0xe9   : > { %v738_v52 = vpop.permute.xlu1 %737  ;;  %v736_v53 = vpop.permute.xlu0 %735 }
  0xea   : > { %813 = vst.msk [vmem:[%s1203_s12 + $0xa8] sm:$0xff] %vm791_vm3, %v738_v52  ;;  %812 = vst.msk [vmem:[%s1203_s12 + $0xa0] sm:$0xff] %vm791_vm3, %v736_v53 }
  0xed   : > { %v742_v54 = vpop.permute.xlu1 %741  ;;  %v740_v55 = vpop.permute.xlu0 %739 }
  0xee   : > { %815 = vst.msk [vmem:[%s1203_s12 + $0xb8] sm:$0xff] %vm791_vm3, %v742_v54  ;;  %814 = vst.msk [vmem:[%s1203_s12 + $0xb0] sm:$0xff] %vm791_vm3, %v740_v55 }
  0xf1   : > { %v746_v56 = vpop.permute.xlu1 %745  ;;  %v744_v57 = vpop.permute.xlu0 %743 }
  0xf2   : > { %817 = vst.msk [vmem:[%s1203_s12 + $0xc8] sm:$0xff] %vm791_vm3, %v746_v56  ;;  %816 = vst.msk [vmem:[%s1203_s12 + $0xc0] sm:$0xff] %vm791_vm3, %v744_v57 }
  0xf5   : > { %v750_v58 = vpop.permute.xlu1 %749  ;;  %v748_v59 = vpop.permute.xlu0 %747 }
  0xf6   : > { %819 = vst.msk [vmem:[%s1203_s12 + $0xd8] sm:$0xff] %vm791_vm3, %v750_v58  ;;  %818 = vst.msk [vmem:[%s1203_s12 + $0xd0] sm:$0xff] %vm791_vm3, %v748_v59 }
  0xf9   : > { %v754_v60 = vpop.permute.xlu1 %753  ;;  %v752_v61 = vpop.permute.xlu0 %751 }
  0xfa   : > { %821 = vst.msk [vmem:[%s1203_s12 + $0xe8] sm:$0xff] %vm791_vm3, %v754_v60  ;;  %820 = vst.msk [vmem:[%s1203_s12 + $0xe0] sm:$0xff] %vm791_vm3, %v752_v61 }
  0xfd   : > { %v758_v62 = vpop.permute.xlu1 %757  ;;  %v756_v63 = vpop.permute.xlu0 %755 }
  0xfe   : > { %823 = vst.msk [vmem:[%s1203_s12 + $0xf8] sm:$0xff] %vm791_vm3, %v758_v62  ;;  %822 = vst.msk [vmem:[%s1203_s12 + $0xf0] sm:$0xff] %vm791_vm3, %v756_v63 }
  0xff PF: > { %s16_s18 = sadd.s32 1, %s985_s18  }
 0x100   : > { %p13_p4 = scmp.ge.s32.totalorder %s16_s18, 6  }
 0x102   :  { %15 = sbr.rel (!%p13_p4) target bundleno = 1 (0x1), region = 87 }

</bundles_post_ra>
